<compile_context>
chip_gen: v6e
topology: v6e:2x2x1
jax: 0.10.0
libtpu: 0.0.40
codegen_flags: <defaults>
</compile_context>

<pallas_src>
import functools

import jax
import jax.numpy as jnp
from jax.experimental import pallas as pl
from jax.experimental.pallas import tpu as pltpu


_MXU_DTYPE = jnp.bfloat16     # MXU operand dtype (native rate on v5e/v6e/v7x)
_H1_DTYPE = jnp.bfloat16      # HBM storage dtype of conv1's output between K2 and K3


def _vmem_limit_bytes():
    """Generation-aware scoped-VMEM budget (v7x: 64 MiB physical, v5e/v6e: 128 MiB)."""
    try:
        cap = int(pltpu.get_tpu_info().vmem_capacity_bytes)
    except Exception:
        cap = 64 * 2**20
    return int(min(max(cap // 2, cap - 8 * 2**20), 100 * 2**20))


_VMEM_LIMIT = _vmem_limit_bytes()


def _pick_row_tile(H, W, cin, cmid, cout, vmem_limit):
    """Largest divisor of H whose fused-conv working set stays inside the VMEM budget."""
    cmax = max(cin, cmid, cout)
    weight_bytes = 2 * (9 * cmax * cmax * 2 + 4 * cmax * 4)   # double-buffered bf16 weights
    budget = max(vmem_limit // 2 - weight_bytes, 2 * 2**20)
    per_row = W * cmax * (
        8      # main input tile, double-buffered (worst-case f32)
        + 8    # output tile, double-buffered (worst-case f32)
        + 8    # residual tile (f32, double-buffered)
        + 18   # (TH*W, 9*Cin) bf16 im2col strip
        + 4    # f32 matmul accumulator
        + 2    # bf16 GN+SiLU slab
    )
    th = max(1, min(H, budget // max(per_row, 1)))
    for d in range(int(th), 0, -1):
        if H % d == 0:
            return d
    return 1


def _pick_stats_tile(H, W, C, vmem_limit):
    """K1 is purely HBM-bound: give it a near-full-VMEM tile of its own."""
    budget = vmem_limit // 2
    per_row = W * C * (4 * 2 + 4)     # double-buffered input + f32 working copy
    th = max(1, min(H, budget // max(per_row, 1)))
    for d in range(int(th), 0, -1):
        if H % d == 0:
            return d
    return 1


# ---------------------------------------------------------------------------
# Shared tile helper: per-(sample,channel) affine (GroupNorm) + SiLU on a halo'd
# row tile, then a 3x3 "same" conv as a single K=9*Cin im2col MXU matmul.
# ---------------------------------------------------------------------------
def _norm_silu_conv_tile(xc_ref, xt_ref, xb_ref, scale_ref, shift_ref, w_ref,
                         bias_ref, *, TH, W):
    i = pl.program_id(1)
    last = pl.num_programs(1) - 1
    Cin = xc_ref.shape[-1]

    scale = scale_ref[0].astype(jnp.float32).reshape(1, 1, Cin)
    shift = shift_ref[0].astype(jnp.float32).reshape(1, 1, Cin)

    def norm_act(v):   # GroupNorm folded to per-(n,c) affine, SiLU in f32, bf16 out for MXU
        y = v.astype(jnp.float32) * scale + shift
        return (y * jax.nn.sigmoid(y)).astype(_MXU_DTYPE)

    zrow = jnp.zeros((1, W, Cin), _MXU_DTYPE)
    mid = norm_act(xc_ref[0])                                # (TH, W, Cin)
    top = jnp.where(i > 0, norm_act(xt_ref[0]), zrow)        # zero at image top edge
    bot = jnp.where(i < last, norm_act(xb_ref[0]), zrow)     # zero at image bottom edge

    zcol = jnp.zeros((TH + 2, 1, Cin), _MXU_DTYPE)
    xp = jnp.concatenate([top, mid, bot], axis=0)            # (TH+2, W,   Cin)
    xp = jnp.concatenate([zcol, xp, zcol], axis=1)           # (TH+2, W+2, Cin)

    # Single im2col strip -> one K=9*Cin matmul (bf16 operands, f32 accumulation).
    taps = [xp[dy:dy + TH, dx:dx + W, :] for dy in range(3) for dx in range(3)]
    strip = jnp.concatenate(taps, axis=-1).reshape(TH * W, 9 * Cin)
    acc = jnp.dot(strip, w_ref[...], preferred_element_type=jnp.float32)
    return acc + bias_ref[...].astype(jnp.float32)           # (TH*W, Cout) f32


# ---------------------------------------------------------------------------
# Kernel 1: per-row-tile partial sum / sum-of-squares of x (GroupNorm1 statistics).
# ---------------------------------------------------------------------------
def _stats_kernel(x_ref, s_ref):
    x = x_ref[0].astype(jnp.float32)
    x2 = x.reshape(-1, x.shape[-1])
    ssum = jnp.sum(x2, axis=0, keepdims=True)
    ssq = jnp.sum(x2 * x2, axis=0, keepdims=True)
    s_ref[0, 0] = jnp.concatenate([ssum, ssq], axis=0)


def gn_channel_stats(x, *, row_tile):
    N, H, W, C = x.shape
    T = H // row_tile
    return pl.pallas_call(
        _stats_kernel,
        out_shape=jax.ShapeDtypeStruct((N, T, 2, C), jnp.float32),
        grid_spec=pltpu.PrefetchScalarGridSpec(
            num_scalar_prefetch=0,
            grid=(N, T),
            in_specs=[pl.BlockSpec((1, row_tile, W, C), lambda n, i: (n, i, 0, 0))],
            out_specs=pl.BlockSpec((1, 1, 2, C), lambda n, i: (n, i, 0, 0)),
        ),
        compiler_params=pltpu.CompilerParams(
            dimension_semantics=("parallel", "parallel"),
            vmem_limit_bytes=_VMEM_LIMIT),
    )(x)


# ---------------------------------------------------------------------------
# Kernel 2: fused GN1-affine + SiLU + conv3x3_1  (+ per-tile GN2 partial stats).
# ---------------------------------------------------------------------------
def _gn_silu_conv_stats_kernel(xc_ref, xt_ref, xb_ref, scale_ref, shift_ref, w_ref,
                               bias_ref, o_ref, stats_ref, *, TH, W):
    h = _norm_silu_conv_tile(xc_ref, xt_ref, xb_ref, scale_ref, shift_ref, w_ref,
                             bias_ref, TH=TH, W=W)
    o_ref[0] = h.reshape(TH, W, o_ref.shape[-1]).astype(o_ref.dtype)
    # GN2 partial stats from the f32 accumulator (before the bf16 store rounding).
    ssum = jnp.sum(h, axis=0, keepdims=True)
    ssq = jnp.sum(h * h, axis=0, keepdims=True)
    stats_ref[0, 0] = jnp.concatenate([ssum, ssq], axis=0)


def gn_silu_conv3x3(x, scale, shift, w, bias, *, row_tile):
    N, H, W, Cin = x.shape
    Cout = w.shape[-1]
    TH = row_tile
    T = H // TH
    wp = w.reshape(9 * Cin, Cout).astype(_MXU_DTYPE)        # bf16 resident weight, K=9*Cin
    halo_top = lambda n, i: (n, jnp.maximum(i * TH - 1, 0), 0, 0)
    halo_bot = lambda n, i: (n, jnp.minimum(i * TH + TH, H - 1), 0, 0)
    kern = functools.partial(_gn_silu_conv_stats_kernel, TH=TH, W=W)
    return pl.pallas_call(
        kern,
        out_shape=(jax.ShapeDtypeStruct((N, H, W, Cout), _H1_DTYPE),
                   jax.ShapeDtypeStruct((N, T, 2, Cout), jnp.float32)),
        grid_spec=pltpu.PrefetchScalarGridSpec(
            num_scalar_prefetch=0,
            grid=(N, T),
            in_specs=[
                pl.BlockSpec((1, TH, W, Cin), lambda n, i: (n, i, 0, 0)),
                pl.BlockSpec((1, 1, W, Cin), halo_top),
                pl.BlockSpec((1, 1, W, Cin), halo_bot),
                pl.BlockSpec((1, 1, Cin), lambda n, i: (n, 0, 0)),
                pl.BlockSpec((1, 1, Cin), lambda n, i: (n, 0, 0)),
                pl.BlockSpec((9 * Cin, Cout), lambda n, i: (0, 0)),
                pl.BlockSpec((1, Cout), lambda n, i: (0, 0)),
            ],
            out_specs=(
                pl.BlockSpec((1, TH, W, Cout), lambda n, i: (n, i, 0, 0)),
                pl.BlockSpec((1, 1, 2, Cout), lambda n, i: (n, i, 0, 0)),
            ),
        ),
        compiler_params=pltpu.CompilerParams(
            dimension_semantics=("parallel", "parallel"),
            vmem_limit_bytes=_VMEM_LIMIT),
    )(x, x, x, scale[:, None, :], shift[:, None, :], wp, bias.reshape(1, Cout))


# ---------------------------------------------------------------------------
# Kernel 3: fused GN2-affine + SiLU + conv3x3_2 + residual add (+ 1x1 shortcut).
# ---------------------------------------------------------------------------
def _gn_silu_conv_res_kernel(hc_ref, ht_ref, hb_ref, scale_ref, shift_ref, w_ref,
                             bias_ref, xres_ref, o_ref, *, TH, W):
    h = _norm_silu_conv_tile(hc_ref, ht_ref, hb_ref, scale_ref, shift_ref, w_ref,
                             bias_ref, TH=TH, W=W)
    res = xres_ref[0].astype(jnp.float32).reshape(TH * W, -1)
    o_ref[0] = (h + res).reshape(TH, W, o_ref.shape[-1]).astype(o_ref.dtype)


def _gn_silu_conv_nin_kernel(hc_ref, ht_ref, hb_ref, scale_ref, shift_ref, w_ref,
                             bias_ref, xres_ref, nw_ref, nb_ref, o_ref, *, TH, W):
    h = _norm_silu_conv_tile(hc_ref, ht_ref, hb_ref, scale_ref, shift_ref, w_ref,
                             bias_ref, TH=TH, W=W)
    x2 = xres_ref[0].reshape(TH * W, -1).astype(_MXU_DTYPE)
    sc = jnp.dot(x2, nw_ref[...], preferred_element_type=jnp.float32)
    sc = sc + nb_ref[...].astype(jnp.float32)
    o_ref[0] = (h + sc).reshape(TH, W, o_ref.shape[-1]).astype(o_ref.dtype)


def gn_silu_conv3x3_residual(h, scale, shift, w, bias, xres, nin_w=None, nin_b=None,
                             *, row_tile, out_dtype):
    N, H, W, Cmid = h.shape
    Cout = w.shape[-1]
    Cin = xres.shape[-1]
    TH = row_tile
    wp = w.reshape(9 * Cmid, Cout).astype(_MXU_DTYPE)
    halo_top = lambda n, i: (n, jnp.maximum(i * TH - 1, 0), 0, 0)
    halo_bot = lambda n, i: (n, jnp.minimum(i * TH + TH, H - 1), 0, 0)
    in_specs = [
        pl.BlockSpec((1, TH, W, Cmid), lambda n, i: (n, i, 0, 0)),
        pl.BlockSpec((1, 1, W, Cmid), halo_top),
        pl.BlockSpec((1, 1, W, Cmid), halo_bot),
        pl.BlockSpec((1, 1, Cmid), lambda n, i: (n, 0, 0)),
        pl.BlockSpec((1, 1, Cmid), lambda n, i: (n, 0, 0)),
        pl.BlockSpec((9 * Cmid, Cout), lambda n, i: (0, 0)),
        pl.BlockSpec((1, Cout), lambda n, i: (0, 0)),
        pl.BlockSpec((1, TH, W, Cin), lambda n, i: (n, i, 0, 0)),
    ]
    args = [h, h, h, scale[:, None, :], shift[:, None, :], wp, bias.reshape(1, Cout), xres]
    if nin_w is not None:
        kern = functools.partial(_gn_silu_conv_nin_kernel, TH=TH, W=W)
        in_specs += [pl.BlockSpec((Cin, Cout), lambda n, i: (0, 0)),
                     pl.BlockSpec((1, Cout), lambda n, i: (0, 0))]
        args += [nin_w.astype(_MXU_DTYPE), nin_b.reshape(1, Cout)]
    else:
        kern = functools.partial(_gn_silu_conv_res_kernel, TH=TH, W=W)
    return pl.pallas_call(
        kern,
        out_shape=jax.ShapeDtypeStruct((N, H, W, Cout), out_dtype),
        grid_spec=pltpu.PrefetchScalarGridSpec(
            num_scalar_prefetch=0,
            grid=(N, H // TH),
            in_specs=in_specs,
            out_specs=pl.BlockSpec((1, TH, W, Cout), lambda n, i: (n, i, 0, 0)),
        ),
        compiler_params=pltpu.CompilerParams(
            dimension_semantics=("parallel", "parallel"),
            vmem_limit_bytes=_VMEM_LIMIT),
    )(*args)


# ---------------------------------------------------------------------------
# GroupNorm partial sums -> per-(sample, channel) scale/shift (tiny JAX glue).
# ---------------------------------------------------------------------------
def _gn_scale_shift(stats, gamma, beta, *, num_groups, eps, count):
    N, _, _, C = stats.shape
    gs = C // num_groups
    tot = stats.sum(axis=1)                             # reduce row-tile partials -> (N, 2, C)
    s = tot[:, 0].reshape(N, num_groups, gs).sum(axis=-1)
    ss = tot[:, 1].reshape(N, num_groups, gs).sum(axis=-1)
    mean = s / count
    var = ss / count - mean * mean
    rstd = jax.lax.rsqrt(jnp.maximum(var, 0.0) + eps)
    mean_c = jnp.repeat(mean, gs, axis=1)
    rstd_c = jnp.repeat(rstd, gs, axis=1)
    a = rstd_c * gamma[None, :]
    b = beta[None, :] - mean_c * a
    return a.astype(jnp.float32), b.astype(jnp.float32)


# ---------------------------------------------------------------------------
# Full ResnetBlock forward (NCHW in / NCHW out).
# ---------------------------------------------------------------------------
def resnet_block_forward(x, p, *, num_groups=32, eps=1e-6, row_tile=None):
    N, Cin, H, W = x.shape
    Cmid = p["conv1_w"].shape[-1]
    Cout = p["conv2_w"].shape[-1]
    xh = jnp.transpose(x, (0, 2, 3, 1))                  # NHWC, channels on lanes

    if row_tile is None:
        row_tile = _pick_row_tile(H, W, Cin, Cmid, Cout, _VMEM_LIMIT)
    assert H % row_tile == 0, "row_tile must divide H"
    stats_tile = _pick_stats_tile(H, W, Cin, _VMEM_LIMIT)

    stats_x = gn_channel_stats(xh, row_tile=stats_tile)
    a1, b1 = _gn_scale_shift(stats_x, p["gn1_gamma"], p["gn1_beta"],
                             num_groups=num_groups, eps=eps,
                             count=float(H * W * (Cin // num_groups)))
    h1, stats_h1 = gn_silu_conv3x3(xh, a1, b1, p["conv1_w"], p["conv1_b"],
                                   row_tile=row_tile)
    a2, b2 = _gn_scale_shift(stats_h1, p["gn2_gamma"], p["gn2_beta"],
                             num_groups=num_groups, eps=eps,
                             count=float(H * W * (Cmid // num_groups)))
    # TODO(synk): nn.Dropout is identity at inference; training-mode dropout not implemented.
    # TODO(synk): temb_proj is declared in the PyTorch module but unused by forward(x); omitted.
    out = gn_silu_conv3x3_residual(h1, a2, b2, p["conv2_w"], p["conv2_b"], xh,
                                   p.get("nin_w"), p.get("nin_b"),
                                   row_tile=row_tile, out_dtype=x.dtype)
    return jnp.transpose(out, (0, 3, 1, 2))              # back to NCHW


# ---------------------------------------------------------------------------
# Deterministic parameter init (shapes from ResnetBlock.__init__).
# ---------------------------------------------------------------------------
def init_params(key, in_ch, out_ch):
    ks = jax.random.split(key, 10)
    p = {
        "gn1_gamma": 1.0 + 0.1 * jax.random.normal(ks[0], (in_ch,), jnp.float32),
        "gn1_beta": 0.1 * jax.random.normal(ks[1], (in_ch,), jnp.float32),
        "conv1_w": 0.1 * jax.random.normal(ks[2], (3, 3, in_ch, out_ch), jnp.float32),
        "conv1_b": 0.1 * jax.random.normal(ks[3], (out_ch,), jnp.float32),
        "gn2_gamma": 1.0 + 0.1 * jax.random.normal(ks[4], (out_ch,), jnp.float32),
        "gn2_beta": 0.1 * jax.random.normal(ks[5], (out_ch,), jnp.float32),
        "conv2_w": 0.1 * jax.random.normal(ks[6], (3, 3, out_ch, out_ch), jnp.float32),
        "conv2_b": 0.1 * jax.random.normal(ks[7], (out_ch,), jnp.float32),
        "nin_w": None,
        "nin_b": None,
    }
    if in_ch != out_ch:
        p["nin_w"] = 0.1 * jax.random.normal(ks[8], (in_ch, out_ch), jnp.float32)
        p["nin_b"] = 0.1 * jax.random.normal(ks[9], (out_ch,), jnp.float32)
    return p


# ---------------------------------------------------------------------------
# Pure-JAX reference for correctness checking.
# ---------------------------------------------------------------------------
def ref_forward(x, p, *, num_groups=32, eps=1e-6):
    def gn(h, gamma, beta):
        N, C, H, W = h.shape
        hg = h.reshape(N, num_groups, (C // num_groups) * H * W)
        mean = hg.mean(axis=2, keepdims=True)
        var = hg.var(axis=2, keepdims=True)
        hn = ((hg - mean) / jnp.sqrt(var + eps)).reshape(N, C, H, W)
        return hn * gamma.reshape(1, C, 1, 1) + beta.reshape(1, C, 1, 1)

    def conv(h, w_hwio, b, pad):
        out = jax.lax.conv_general_dilated(
            h, w_hwio, window_strides=(1, 1), padding=((pad, pad), (pad, pad)),
            dimension_numbers=("NCHW", "HWIO", "NCHW"))
        return out + b.reshape(1, -1, 1, 1)

    h = gn(x, p["gn1_gamma"], p["gn1_beta"])
    h = h * jax.nn.sigmoid(h)
    h = conv(h, p["conv1_w"], p["conv1_b"], 1)
    h = gn(h, p["gn2_gamma"], p["gn2_beta"])
    h = h * jax.nn.sigmoid(h)
    h = conv(h, p["conv2_w"], p["conv2_b"], 1)
    if p["nin_w"] is not None:
        cin, cout = p["nin_w"].shape
        xs = conv(x, p["nin_w"].reshape(1, 1, cin, cout), p["nin_b"], 0)
    else:
        xs = x
    return xs + h


if __name__ == "__main__":
    key = jax.random.PRNGKey(0)
    configs = [
        (2, 32, 64, 16, 16, 8),     # Cin != Cout -> 1x1 nin_shortcut path, 2 row tiles (halo)
        (2, 64, 64, 16, 16, None),  # Cin == Cout -> identity residual, auto row tile
    ]
    for (N, in_ch, out_ch, H, W, row_tile) in configs:
        kx, kp, key = jax.random.split(key, 3)
        x = jax.random.normal(kx, (N, in_ch, H, W), jnp.float32)   # NCHW like PyTorch
        params = init_params(kp, in_ch, out_ch)

        out = jax.block_until_ready(resnet_block_forward(x, params, row_tile=row_tile))
        ref = jax.block_until_ready(ref_forward(x, params))

        assert out.shape == (N, out_ch, H, W), out.shape
        # bf16 MXU operands + bf16 h1 intermediate -> compare in relative error.
        rel = float(jnp.max(jnp.abs(out - ref)) / (jnp.max(jnp.abs(ref)) + 1e-6))
        assert rel < 3e-2, f"relative error vs reference: {rel}"
    print("KERNEL_OK")
</pallas_src>

<mosaic_0001>
module attributes {stable_mosaic.version = 11 : i64} {
  func.func @_stats_kernel(%arg0: i32, %arg1: i32, %arg2: memref<1x16x16x32xf32, #tpu.memory_space<vmem>>, %arg3: memref<1x1x2x32xf32, #tpu.memory_space<vmem>>) attributes {dimension_semantics = [#tpu.dimension_semantics<parallel>, #tpu.dimension_semantics<parallel>], iteration_bounds = array<i64: 2, 1>, scalar_prefetch = 0 : i64, scratch_operands = 0 : i64, tpu.core_type = #tpu.core_type<tc>, window_params = [{transform_indices = @transform_0, window_bounds = array<i64: 1, 16, 16, 32>}, {transform_indices = @transform_1, window_bounds = array<i64: 1, 1, 2, 32>}]} {
    %c0 = arith.constant 0 : index
    %c0_0 = arith.constant 0 : index
    %c0_1 = arith.constant 0 : index
    %c0_2 = arith.constant 0 : index
    %0 = vector.load %arg2[%c0, %c0_0, %c0_1, %c0_2] : memref<1x16x16x32xf32, #tpu.memory_space<vmem>>, vector<1x16x16x32xf32>
    %1 = vector.shape_cast %0 : vector<1x16x16x32xf32> to vector<16x16x32xf32>
    %2 = vector.shape_cast %1 : vector<16x16x32xf32> to vector<256x32xf32>
    %cst = arith.constant dense<0.000000e+00> : vector<32xf32>
    %3 = vector.multi_reduction <add>, %2, %cst [0] : vector<256x32xf32> to vector<32xf32>
    %4 = vector.shape_cast %3 : vector<32xf32> to vector<1x32xf32>
    %5 = arith.mulf %2, %2 : vector<256x32xf32>
    %cst_3 = arith.constant dense<0.000000e+00> : vector<32xf32>
    %6 = vector.multi_reduction <add>, %5, %cst_3 [0] : vector<256x32xf32> to vector<32xf32>
    %7 = vector.shape_cast %6 : vector<32xf32> to vector<1x32xf32>
    %8 = tpu.concatenate %4, %7 in 0 : vector<1x32xf32>, vector<1x32xf32> -> vector<2x32xf32>
    %c0_4 = arith.constant 0 : index
    %c0_5 = arith.constant 0 : index
    %c0_6 = arith.constant 0 : index
    %c0_7 = arith.constant 0 : index
    %9 = vector.load %arg3[%c0_4, %c0_5, %c0_6, %c0_7] : memref<1x1x2x32xf32, #tpu.memory_space<vmem>>, vector<1x1x2x32xf32>
    %10 = vector.shape_cast %9 : vector<1x1x2x32xf32> to vector<2x32xf32>
    %11 = vector.shape_cast %8 : vector<2x32xf32> to vector<1x1x2x32xf32>
    tpu.vector_store %arg3[%c0_4, %c0_5, %c0_6, %c0_7], %11 {strides = array<i32>} : memref<1x1x2x32xf32, #tpu.memory_space<vmem>>, vector<1x1x2x32xf32>,
    return
  }
  func.func @transform_0(%arg0: i32, %arg1: i32) -> (i32, i32, i32, i32) {
    %c0_i32 = arith.constant 0 : i32
    %c0_i32_0 = arith.constant 0 : i32
    %c0_i32_1 = arith.constant 0 : i32
    return %arg0, %arg1, %c0_i32, %c0_i32_0 : i32, i32, i32, i32
  }
  func.func @transform_1(%arg0: i32, %arg1: i32) -> (i32, i32, i32, i32) {
    %c0_i32 = arith.constant 0 : i32
    %c0_i32_0 = arith.constant 0 : i32
    %c0_i32_1 = arith.constant 0 : i32
    return %arg0, %arg1, %c0_i32, %c0_i32_0 : i32, i32, i32, i32
  }
}

</mosaic_0001>

<bundles_post_ra>
// kernel: tpu_custom_call.1
= control target key start
LH: loop header
LB: loop body
LE: loop exit
PB: predicated region body
PF: predicated region fallthrough
CT: control target
= control target key end

     0   :  { %6 = vsyncpa [#allocation3], 0  ;;  %s899_s0 = inlined_call_operand.hbm [shape: f32[2,16,16,32], index: 0, kind: input, shape index: {}]   ;;  %s900_s1 = inlined_call_operand.hbm [shape: f32[2,1,2,32], index: 1, kind: output, shape index: {}]  }
   0x1   :  { %8 = vsyncpa [#allocation3 + $0x1], 0 }
   0x2   :  { %9 = vsyncpa [#allocation4], 0 }
   0x3   :  { %11 = vsyncpa [#allocation4 + $0x1], 0  ;;  %s662_s6 = smov 0   ;;  %s664_s7 = smov 0  }
   0x4   :  { %s666_s8 = smov 0   ;;  %s668_s9 = smov 0  }
   0x5   :  { %s670_s10 = smov 0   ;;  %s672_s11 = smov 0  }
   0x6 LB: > { %s459_s12 = sadd.s32 4294967295, %s646_s11   ;;  %s460_s13 = sadd.s32 4294967294, %s646_s11   ;;  %s646_s11 = sphi %s672_s11, %s17_s11   ;;  %s642_s10 = sphi %s670_s10, %s911_s10   ;;  %s638_s9 = sphi %s668_s9, %s910_s9   ;;  %s634_s8 = sphi %s666_s8, %s909_s8   ;;  %s630_s7 = sphi %s664_s7, %s908_s7   ;;  %s626_s6 = sphi %s662_s6, %s907_s6  }
   0x7   : > { %s29_s14 = sadd.s32 1, %s642_s10  ;;  %s38_s15 = sadd.s32 1, %s634_s8 }
   0x8   : > { %p31_p0 = scmp.ge.s32.totalorder %s29_s14, 2  ;;  %p45_p1 = scmp.ne.s32.totalorder %s634_s8, %s630_s7 }
   0x9   : > { %p46_p2 = scmp.eq.s32.totalorder %s646_s11, 0  ;;  %p51_p3 = scmp.ne.s32.totalorder %s630_s7, %s626_s6 }
   0xa   : > { %s913_s14 = smov (%p31_p0, %s29_s14), 0  ;;  %p52_p5 = scmp.eq.s32.totalorder %s459_s12, 0 }
   0xb   : > { %p703_p4 = por %p46_p2, %p45_p1  ;;  %s33_s17 = ssub.s32 %s642_s10, %s913_s14 }
   0xc   : > { %p77_p6 = scmp.eq.s32.totalorder %s459_s12, 1  ;;  %p36_p7 = scmp.eq.s32.totalorder %s33_s17, 0 }
   0xd   : > { %p709_p8 = por %p52_p5, %p51_p3  ;;  %p83_p10 = scmp.eq.s32.totalorder %s460_s13, 1 }
   0xe   : > { %p713_p9 = por %p77_p6, %p45_p1  ;;  %p486_p13 = scmp.lt.s32.totalorder %s646_s11, 2 }
   0xf   : > { %s718_s20 = scalar_select %p36_p7, %s634_s8, %s38_s15  }
  0x10   : > { %p720_p11 = por %p83_p10, %p51_p3  ;;  %s103_s22 = sand.u32 1, %s634_s8  }
  0x11   : > { %s463_s23 = sshll.u32 %s103_s22, 8  ;;  %s473_s24 = sshll.u32 %s642_s10, 12 }
  0x12   : > { %s116_s27 = scalar_lea.hbm %s899_s0, %s473_s24  ;;  %s107_s28 = scalar_lea.vmem [#allocation2], %s463_s23 }
  0x13   : > { %s117_s29 = sshll.u32 %s107_s28, 4  ;;  %p733_p0 = pnand %p486_p13, %p703_p4  ;;  %s118_s29 = int_to_ptr.vmem [resolvable:$true] %s117_s29 }
  0x14   : > { %p466_p1 = scmp.ge.s32.totalorder %s646_s11, 1  ;;  %s104_s2 = scalar_lea.sflag [#allocation3], %s103_s22 }
  0x15   : > { %p540_p2 = pneg %p733_p0  ;;  %s551_s3 = scalar_lea.vmem %s118_s29, 4096 }
  0x16   : > { %p552_p3 = scmp.ne.s32.totalorder %s118_s29, %s551_s3  ;;  %s648_s4 = smov [#allocation2]  }
  0x17   : > { %s556_s5 = sshll.u32 %s648_s4, 4  ;;  %s557_s5 = int_to_ptr.vmem [resolvable:$false] %s556_s5 }
  0x18   : > { %p554_p5 = pnand %p552_p3, %p540_p2  ;;  %s558_s12 = scalar_lea.vmem %s557_s5, 8192 }
  0x19   : > { %p559_p7 = scmp.lt.s32.totalorder %s118_s29, %s557_s5  ;;  %p560_p10 = scmp.lt.s32.totalorder %s558_s12, %s551_s3 }
  0x1a   : > { %p555_p6 = pneg %p554_p5 }
  0x1b   : > { %p561_p12 = por %p560_p10, %p559_p7 }
  0x1d   : > { %p562_p4 = pnand %p561_p12, %p555_p6 }
  0x1f   : > { %565 = shalt.err (!%p562_p4)
}
  0x20   : > { %s649_s13 = smov 128   ;;  %s650_s15 = smov 8  }
  0x21   : > { %481 = dma.hbm_to_vmem [thread:$0]  (!%p733_p0), %s116_s27, 4096, %s118_s29, %s104_s2, %s649_s13, %s649_s13, %s650_s15  }
  0x22   : > { %p125_p13 = scmp.lt.s32.totalorder %s646_s11, 3 }
  0x24   : > { %p126_p2 = pnand %p466_p1, %p125_p13 }
  0x25   : > { %s746_s16 = sand.u32 (!%p126_p2), 1, %s630_s7  }
  0x26   : > { %129 = sbr.rel (%p126_p2) target bundleno = 139 (0x8b), region = 24  ;;  %s467_s17 = sshll.u32 (!%p126_p2), %s746_s16, 8 }
  0x27   : > { %s132_s22 = scalar_lea.sflag (!%p126_p2), [#allocation3], %s746_s16  ;;  %s750_s23 = scalar_lea.vmem (!%p126_p2), [#allocation2], %s467_s17 }
  0x2b   : > { %617 = dma.done.wait (%p709_p8), %s132_s22, 4096  }
  0x2c   : > { %619 = vsyncadd (%p709_p8), %s132_s22, 4294963200  ;;  %vm187_vm0 = vcmask 261120   ;;  %v155_v0 = vld [vmem:[%s750_s23] sm:$0xff]  ;;  %v156_v1 = vld [vmem:[%s750_s23 + $0x8] sm:$0xff]  ;;  %s468_s18 = sshll.u32 %s746_s16, 1  ;;  %s470_s24 = sshll.u32 %s638_s9, 5 }
  0x2d   : > { %v157_v2 = vld [vmem:[%s750_s23 + $0x10] sm:$0xff]  ;;  %v188_v3 = vsel %vm187_vm0, %v155_v0, 0.0  ;;  %v189_v4 = vsel %vm187_vm0, %v156_v1, 0.0  ;;  %v158_v6 = vld [vmem:[%s750_s23 + $0x18] sm:$0xff]  ;;  %v159_v9 = vld [vmem:[%s750_s23 + $0x20] sm:$0xff]  ;;  %v257_v27 = vmul.f32 %v155_v0, %v155_v0  ;;  %v258_v28 = vmul.f32 %v156_v1, %v156_v1  ;;  %s153_s25 = scalar_lea.vmem [#allocation5], %s468_s18  ;;  %s857_s29 = scalar_lea.hbm %s900_s1, %s470_s24 }
  0x2e   : > { %v191_v5 = vsel %vm187_vm0, %v157_v2, 0.0  ;;  %v190_v7 = vadd.f32 %v189_v4, %v188_v3  ;;  %v193_v8 = vsel %vm187_vm0, %v158_v6, 0.0  ;;  %v195_v11 = vsel %vm187_vm0, %v159_v9, 0.0  ;;  %v160_v12 = vld [vmem:[%s750_s23 + $0x28] sm:$0xff]  ;;  %v161_v15 = vld [vmem:[%s750_s23 + $0x30] sm:$0xff]  ;;  %v162_v18 = vld [vmem:[%s750_s23 + $0x38] sm:$0xff] }
  0x2f   : > { %v197_v14 = vsel %vm187_vm0, %v160_v12, 0.0  ;;  %v199_v17 = vsel %vm187_vm0, %v161_v15, 0.0  ;;  %v201_v20 = vsel %vm187_vm0, %v162_v18, 0.0  ;;  %v163_v21 = vld [vmem:[%s750_s23 + $0x40] sm:$0xff]  ;;  %v164_v24 = vld [vmem:[%s750_s23 + $0x48] sm:$0xff]  ;;  %v259_v29 = vmul.f32 %v157_v2, %v157_v2  ;;  %v165_v30 = vld [vmem:[%s750_s23 + $0x50] sm:$0xff] }
  0x30   : > { %v192_v10 = vadd.f32 %v191_v5, %v190_v7  ;;  %v203_v23 = vsel %vm187_vm0, %v163_v21, 0.0  ;;  %v205_v26 = vsel %vm187_vm0, %v164_v24, 0.0  ;;  %v166_v32 = vld [vmem:[%s750_s23 + $0x58] sm:$0xff]  ;;  %v207_v33 = vsel %vm187_vm0, %v165_v30, 0.0  ;;  %v167_v41 = vld [vmem:[%s750_s23 + $0x60] sm:$0xff]  ;;  %v168_v47 = vld [vmem:[%s750_s23 + $0x68] sm:$0xff] }
  0x31   : > { %v260_v34 = vmul.f32 %v158_v6, %v158_v6  ;;  %v209_v36 = vsel %vm187_vm0, %v166_v32, 0.0  ;;  %v261_v37 = vmul.f32 %v159_v9, %v159_v9  ;;  %v289_v38 = vsel %vm187_vm0, %v257_v27, 0.0  ;;  %v169_v53 = vld [vmem:[%s750_s23 + $0x70] sm:$0xff]  ;;  %v170_v59 = vld [vmem:[%s750_s23 + $0x78] sm:$0xff]  ;;  %v171_v1 = vld [vmem:[%s750_s23 + $0x80] sm:$0xff]  ;;  %s377_s26 = sshll.u32 %s153_s25, 4  ;;  %s378_s26 = int_to_ptr.vmem [resolvable:$true] %s377_s26 }
  0x32   : > { %v194_v13 = vadd.f32 %v193_v8, %v192_v10  ;;  %v290_v39 = vsel %vm187_vm0, %v258_v28, 0.0  ;;  %v292_v40 = vsel %vm187_vm0, %v259_v29, 0.0  ;;  %v211_v44 = vsel %vm187_vm0, %v167_v41, 0.0  ;;  %v172_v7 = vld [vmem:[%s750_s23 + $0x88] sm:$0xff]  ;;  %s363_s30 = scalar_lea.sflag [#allocation4], %s746_s16  ;;  %s566_s2 = scalar_lea.vmem %s378_s26, 32 }
  0x33   : > { %v291_v43 = vadd.f32 %v290_v39, %v289_v38  ;;  %v262_v45 = vmul.f32 %v160_v12, %v160_v12  ;;  %v294_v46 = vsel %vm187_vm0, %v260_v34, 0.0  ;;  %v213_v50 = vsel %vm187_vm0, %v168_v47, 0.0  ;;  %p567_p8 = scmp.ne.s32.totalorder %s378_s26, %s566_s2  ;;  %s651_s9 = smov [#allocation5]  }
  0x34   : > { %v196_v16 = vadd.f32 %v195_v11, %v194_v13  ;;  %v263_v51 = vmul.f32 %v161_v15, %v161_v15  ;;  %v296_v52 = vsel %vm187_vm0, %v261_v37, 0.0  ;;  %v215_v56 = vsel %vm187_vm0, %v169_v53, 0.0  ;;  %v173_v13 = vld [vmem:[%s750_s23 + $0x90] sm:$0xff]  ;;  %s570_s3 = sshll.u32 %s651_s9, 4  ;;  %s571_s3 = int_to_ptr.vmem [resolvable:$false] %s570_s3 }
  0x35   : > { %v293_v49 = vadd.f32 %v292_v40, %v291_v43  ;;  %v264_v57 = vmul.f32 %v162_v18, %v162_v18  ;;  %v298_v58 = vsel %vm187_vm0, %v262_v45, 0.0  ;;  %v217_v62 = vsel %vm187_vm0, %v170_v59, 0.0  ;;  %v177_v37 = vld [vmem:[%s750_s23 + $0xb0] sm:$0xff]  ;;  %v178_v43 = vld [vmem:[%s750_s23 + $0xb8] sm:$0xff]  ;;  %p568_p12 = pnand %p567_p8, %p713_p9  ;;  %s572_s4 = scalar_lea.vmem %s571_s3, 64 }
  0x36   : > { %v198_v19 = vadd.f32 %v197_v14, %v196_v16  ;;  %v265_v63 = vmul.f32 %v163_v21, %v163_v21  ;;  %v300_v0 = vsel %vm187_vm0, %v263_v51, 0.0  ;;  %v219_v4 = vsel %vm187_vm0, %v171_v1, 0.0  ;;  %p573_p1 = scmp.lt.s32.totalorder %s378_s26, %s571_s3  ;;  %p574_p3 = scmp.lt.s32.totalorder %s572_s4, %s566_s2 }
  0x37   : > { %v295_v55 = vadd.f32 %v294_v46, %v293_v49  ;;  %v266_v5 = vmul.f32 %v164_v24, %v164_v24  ;;  %v302_v6 = vsel %vm187_vm0, %v264_v57, 0.0  ;;  %v221_v10 = vsel %vm187_vm0, %v172_v7, 0.0  ;;  %v179_v49 = vld [vmem:[%s750_s23 + $0xc0] sm:$0xff]  ;;  %p569_p0 = pneg %p568_p12 }
  0x38   : > { %v200_v22 = vadd.f32 %v199_v17, %v198_v19  ;;  %v267_v11 = vmul.f32 %v165_v30, %v165_v30  ;;  %v304_v12 = vsel %vm187_vm0, %v265_v63, 0.0  ;;  %v223_v16 = vsel %vm187_vm0, %v173_v13, 0.0  ;;  %v174_v19 = vld [vmem:[%s750_s23 + $0x98] sm:$0xff]  ;;  %p575_p5 = por %p574_p3, %p573_p1 }
  0x39   : > { %v297_v61 = vadd.f32 %v296_v52, %v295_v55  ;;  %v268_v17 = vmul.f32 %v166_v32, %v166_v32  ;;  %v306_v18 = vsel %vm187_vm0, %v266_v5, 0.0  ;;  %v270_v29 = vmul.f32 %v168_v47, %v168_v47  ;;  %v180_v55 = vld [vmem:[%s750_s23 + $0xc8] sm:$0xff] }
  0x3a   : > { %v202_v25 = vadd.f32 %v201_v20, %v200_v22  ;;  %v225_v22 = vsel %vm187_vm0, %v174_v19, 0.0  ;;  %v308_v24 = vsel %vm187_vm0, %v267_v11, 0.0  ;;  %v231_v40 = vsel %vm187_vm0, %v177_v37, 0.0  ;;  %p576_p6 = pnand %p575_p5, %p569_p0 }
  0x3b   : > { %v299_v3 = vadd.f32 %v298_v58, %v297_v61  ;;  %v310_v30 = vsel %vm187_vm0, %v268_v17, 0.0  ;;  %v233_v46 = vsel %vm187_vm0, %v178_v43, 0.0  ;;  %v273_v47 = vmul.f32 %v171_v1, %v171_v1  ;;  %v181_v61 = vld [vmem:[%s750_s23 + $0xd0] sm:$0xff] }
  0x3c   : > { %v204_v31 = vadd.f32 %v203_v23, %v202_v25  ;;  %v269_v23 = vmul.f32 %v167_v41, %v167_v41  ;;  %v175_v25 = vld [vmem:[%s750_s23 + $0xa0] sm:$0xff]  ;;  %v272_v41 = vmul.f32 %v170_v59, %v170_v59  ;;  %v235_v52 = vsel %vm187_vm0, %v179_v49, 0.0 }
  0x3d   : > { %v301_v9 = vadd.f32 %v300_v0, %v299_v3  ;;  %v227_v28 = vsel %vm187_vm0, %v175_v25, 0.0  ;;  %v237_v58 = vsel %vm187_vm0, %v180_v55, 0.0  ;;  %v275_v59 = vmul.f32 %v173_v13, %v173_v13  ;;  %v182_v3 = vld [vmem:[%s750_s23 + $0xd8] sm:$0xff] }
  0x3e   : > { %v206_v35 = vadd.f32 %v205_v26, %v204_v31  ;;  %v176_v31 = vld [vmem:[%s750_s23 + $0xa8] sm:$0xff]  ;;  %v239_v0 = vsel %vm187_vm0, %v181_v61, 0.0  ;;  %v276_v1 = vmul.f32 %v174_v19, %v174_v19  ;;  %v279_v19 = vmul.f32 %v177_v37, %v177_v37 }
  0x3f   : > { %v303_v15 = vadd.f32 %v302_v6, %v301_v9  ;;  %v229_v34 = vsel %vm187_vm0, %v176_v31, 0.0  ;;  %v241_v6 = vsel %vm187_vm0, %v182_v3, 0.0  ;;  %v183_v9 = vld [vmem:[%s750_s23 + $0xe0] sm:$0xff]  ;;  %v278_v13 = vmul.f32 %v176_v31, %v176_v31 }
  0x40   : > { %v208_v42 = vadd.f32 %v207_v33, %v206_v35  ;;  %v271_v35 = vmul.f32 %v169_v53, %v169_v53  ;;  %v274_v53 = vmul.f32 %v172_v7, %v172_v7  ;;  %v277_v7 = vmul.f32 %v175_v25, %v175_v25  ;;  %v185_v25 = vld [vmem:[%s750_s23 + $0xf0] sm:$0xff] }
  0x41   : > { %v305_v21 = vadd.f32 %v304_v12, %v303_v15  ;;  %v243_v12 = vsel %vm187_vm0, %v183_v9, 0.0  ;;  %v184_v15 = vld [vmem:[%s750_s23 + $0xe8] sm:$0xff]  ;;  %vm358_vm1 = vcmask 1040384   ;;  %vm360_vm2 = vcmask 254976  }
  0x42   : > { %v210_v48 = vadd.f32 %v209_v36, %v208_v42  ;;  %v312_v36 = vsel %vm187_vm0, %v269_v23, 0.0  ;;  %v314_v42 = vsel %vm187_vm0, %v270_v29, 0.0  ;;  %v280_v23 = vmul.f32 %v178_v43, %v178_v43 }
  0x43   : > { %v307_v27 = vadd.f32 %v306_v18, %v305_v21  ;;  %v245_v18 = vsel %vm187_vm0, %v184_v15, 0.0  ;;  %v281_v29 = vmul.f32 %v179_v49, %v179_v49 }
  0x44   : > { %v212_v54 = vadd.f32 %v211_v44, %v210_v48  ;;  %v316_v48 = vsel %vm187_vm0, %v271_v35, 0.0 }
  0x45   : > { %v309_v33 = vadd.f32 %v308_v24, %v307_v27  ;;  %v330_v24 = vsel %vm187_vm0, %v278_v13, 0.0 }
  0x46   : > { %v214_v60 = vadd.f32 %v213_v50, %v212_v54  ;;  %v318_v54 = vsel %vm187_vm0, %v272_v41, 0.0  ;;  %v284_v41 = vmul.f32 %v182_v3, %v182_v3 }
  0x47   : > { %v311_v39 = vadd.f32 %v310_v30, %v309_v33  ;;  %v332_v30 = vsel %vm187_vm0, %v279_v19, 0.0  ;;  %v334_v33 = vsel %vm187_vm0, %v280_v23, 0.0 }
  0x48   : > { %v216_v2 = vadd.f32 %v215_v56, %v214_v60  ;;  %v320_v60 = vsel %vm187_vm0, %v273_v47, 0.0  ;;  %v342_v49 = vsel %vm187_vm0, %v284_v41, 0.0 }
  0x49   : > { %v313_v45 = vadd.f32 %v312_v36, %v311_v39  ;;  %v336_v39 = vsel %vm187_vm0, %v281_v29, 0.0 }
  0x4a   : > { %v218_v8 = vadd.f32 %v217_v62, %v216_v2  ;;  %v322_v2 = vsel %vm187_vm0, %v274_v53, 0.0 }
  0x4b   : > { %v315_v51 = vadd.f32 %v314_v42, %v313_v45  ;;  %v285_v45 = vmul.f32 %v183_v9, %v183_v9 }
  0x4c   : > { %v220_v14 = vadd.f32 %v219_v4, %v218_v8  ;;  %v324_v8 = vsel %vm187_vm0, %v275_v59, 0.0 }
  0x4d   : > { %v317_v57 = vadd.f32 %v316_v48, %v315_v51  ;;  %v286_v48 = vmul.f32 %v184_v15, %v184_v15  ;;  %v344_v53 = vsel %vm187_vm0, %v285_v45, 0.0 }
  0x4e   : > { %v222_v20 = vadd.f32 %v221_v10, %v220_v14  ;;  %v326_v14 = vsel %vm187_vm0, %v276_v1, 0.0 }
  0x4f   : > { %v319_v63 = vadd.f32 %v318_v54, %v317_v57 }
  0x50   : > { %v224_v26 = vadd.f32 %v223_v16, %v222_v20  ;;  %v328_v20 = vsel %vm187_vm0, %v277_v7, 0.0 }
  0x51   : > { %v321_v5 = vadd.f32 %v320_v60, %v319_v63 }
  0x52   : > { %v226_v32 = vadd.f32 %v225_v22, %v224_v26 }
  0x53   : > { %v323_v11 = vadd.f32 %v322_v2, %v321_v5 }
  0x54   : > { %v228_v38 = vadd.f32 %v227_v28, %v226_v32  ;;  %v247_v28 = vsel %vm187_vm0, %v185_v25, 0.0  ;;  %v282_v32 = vmul.f32 %v180_v55, %v180_v55 }
  0x55   : > { %v325_v17 = vadd.f32 %v324_v8, %v323_v11 }
  0x56   : > { %v230_v44 = vadd.f32 %v229_v34, %v228_v38  ;;  %v186_v34 = vld [vmem:[%s750_s23 + $0xf8] sm:$0xff]  ;;  %v283_v38 = vmul.f32 %v181_v61, %v181_v61  ;;  %v338_v42 = vsel %vm187_vm0, %v282_v32, 0.0 }
  0x57   : > { %v327_v22 = vadd.f32 %v326_v14, %v325_v17  ;;  %v249_v37 = vsel %vm187_vm0, %v186_v34, 0.0  ;;  %v288_v55 = vmul.f32 %v186_v34, %v186_v34 }
  0x58   : > { %v232_v50 = vadd.f32 %v231_v40, %v230_v44 }
  0x59   : > { %v329_v27 = vadd.f32 %v328_v20, %v327_v22  ;;  %v350_v61 = vsel %vm187_vm0, %v288_v55, 0.0 }
  0x5a   : > { %v234_v56 = vadd.f32 %v233_v46, %v232_v50  ;;  %v340_v46 = vsel %vm187_vm0, %v283_v38, 0.0 }
  0x5b   : > { %v331_v31 = vadd.f32 %v330_v24, %v329_v27 }
  0x5c   : > { %v236_v62 = vadd.f32 %v235_v52, %v234_v56  ;;  %v287_v52 = vmul.f32 %v185_v25, %v185_v25  ;;  %v346_v56 = vsel %vm187_vm0, %v286_v48, 0.0 }
  0x5d   : > { %v333_v36 = vadd.f32 %v332_v30, %v331_v31 }
  0x5e   : > { %v238_v4 = vadd.f32 %v237_v58, %v236_v62  ;;  %v348_v59 = vsel %vm187_vm0, %v287_v52, 0.0 }
  0x5f   : > { %v335_v40 = vadd.f32 %v334_v33, %v333_v36 }
  0x60   : > { %v240_v10 = vadd.f32 %v239_v0, %v238_v4 }
  0x61   : > { %v337_v44 = vadd.f32 %v336_v39, %v335_v40 }
  0x62   : > { %v242_v16 = vadd.f32 %v241_v6, %v240_v10 }
  0x63   : > { %v339_v47 = vadd.f32 %v338_v42, %v337_v44 }
  0x64   : > { %v244_v21 = vadd.f32 %v243_v12, %v242_v16 }
  0x65   : > { %v341_v51 = vadd.f32 %v340_v46, %v339_v47 }
  0x66   : > { %v246_v26 = vadd.f32 %v245_v18, %v244_v21 }
  0x67   : > { %v343_v54 = vadd.f32 %v342_v49, %v341_v51 }
  0x68   : > { %v248_v35 = vadd.f32 %v247_v28, %v246_v26 }
  0x69   : > { %v345_v58 = vadd.f32 %v344_v53, %v343_v54 }
  0x6a   : > { %v250_v43 = vadd.f32 %v249_v37, %v248_v35 }
  0x6b   : > { %v347_v60 = vadd.f32 %v346_v56, %v345_v58 }
  0x6c   : > { %v251_v50 = vrot.slane %v250_v43, 4 }
  0x6d   : > { %v349_v63 = vadd.f32 %v348_v59, %v347_v60 }
  0x6e   : > { %v252_v57 = vadd.f32 %v251_v50, %v250_v43 }
  0x6f   : > { %v351_v0 = vadd.f32 %v350_v61, %v349_v63 }
  0x70   : > { %v253_v62 = vrot.slane %v252_v57, 2 }
  0x71   : > { %v352_v2 = vrot.slane %v351_v0, 4 }
  0x72   : > { %v254_v1 = vadd.f32 %v253_v62, %v252_v57 }
  0x73   : > { %v353_v3 = vadd.f32 %v352_v2, %v351_v0 }
  0x74   : > { %v255_v4 = vrot.slane %v254_v1, 1 }
  0x75   : > { %v354_v5 = vrot.slane %v353_v3, 2 }
  0x76   : > { %v256_v7 = vadd.f32 %v255_v4, %v254_v1 }
  0x77   : > { %v355_v6 = vadd.f32 %v354_v5, %v353_v3 }
  0x79   : > { %v356_v8 = vrot.slane %v355_v6, 1 }
  0x7b   : > { %v357_v9 = vadd.f32 %v356_v8, %v355_v6 }
  0x7d   : > { %v359_v10 = vsel %vm358_vm1, %v256_v7, %v357_v9 }
  0x7e   : > { %361 = vst.msk [vmem:[%s153_s25] sm:$0x3] %vm360_vm2, %v359_v10 }
  0x7f   : > { %579 = shalt.err (!%p576_p6)
}
  0x80   : > { %s580_s5 = scalar_lea.hbm %s857_s29, 32  ;;  %s584_s15 = scalar_lea.hbm %s900_s1, 64 }
  0x81   : > { %p581_p7 = scmp.ne.s32.totalorder %s857_s29, %s580_s5  ;;  %p585_p13 = scmp.lt.s32.totalorder %s857_s29, %s900_s1 }
  0x82   : > { %p586_p2 = scmp.lt.s32.totalorder %s584_s15, %s580_s5 }
  0x83   : > { %p582_p10 = pnand %p581_p7, %p713_p9 }
  0x84   : > { %p587_p8 = por %p586_p2, %p585_p13 }
  0x85   : > { %p583_p4 = pneg %p582_p10 }
  0x87   : > { %p588_p12 = pnand %p587_p8, %p583_p4 }
  0x89   : > { %591 = shalt.err (!%p588_p12)
}
  0x8a   : > { %476 = dma.vmem_to_hbm [thread:$0]  (%p713_p9), %s378_s26, 32, %s857_s29, %s363_s30  }
  0x8b PF: > { %s389_s22 = sand.u32 1, %s626_s6   ;;  %p906_p0 = scmp.ge.s32.totalorder %s646_s11, 2 }
  0x8c   : > { %s390_s23 = scalar_lea.sflag [#allocation4], %s389_s22 }
  0x8d   : > { %p483_p1 = pnand %p906_p0, %p720_p11 }
  0x8f   : > { %p484_p3 = pneg %p483_p1 }
  0x91   : > { %621 = dma.done.wait (%p484_p3), %s390_s23, 32  }
  0x92   : > { %623 = vsyncadd (%p484_p3), %s390_s23, 4294967264  ;;  %s17_s11 = sadd.s32 1, %s646_s11   ;;  %s907_s6 = smov %s630_s7 }
  0x93   : > { %p14_p5 = scmp.ge.s32.totalorder %s17_s11, 4   ;;  %s908_s7 = smov %s634_s8 }
  0x94   : > { %s909_s8 = smov %s718_s20  ;;  %s910_s9 = smov %s642_s10 }
  0x95   : > { %s911_s10 = smov %s913_s14  ;;  %16 = sbr.rel (!%p14_p5) target bundleno = 6 (0x6), region = 69 }
  0x9a   :  { %395 = vsyncpa [#allocation3], 1 }
  0x9b   :  { %397 = vsyncpa [#allocation3 + $0x1], 1 }
  0x9c   :  { %398 = vsyncpa [#allocation4], 1 }
  0x9d   :  { %400 = vsyncpa [#allocation4 + $0x1], 1 }

</bundles_post_ra>
